<compile_context>
chip_gen: v7x
topology: tpu7x:2x2x1
jax: 0.10.0
libtpu: 0.0.40
codegen_flags: <defaults>
</compile_context>

<pallas_src>
import functools

import jax
import jax.numpy as jnp
from jax.experimental import pallas as pl
from jax.experimental.pallas import tpu as pltpu

_LANE = 128
_MIB = 1 << 20


def _round_up(x, m):
    return (x + m - 1) // m * m


def _sublane_mult(dtype):
    # Sub-32-bit dtypes pack along sublanes: f32 -> 8, bf16 -> 16, int8/fp8 -> 32.
    return max(8, 32 // jnp.dtype(dtype).itemsize)


def _vmem_budget_bytes():
    # Per-TensorCore budget that is safe on every generation (v7x: 64 MiB / TC).
    try:
        return int(min(pltpu.get_tpu_info().vmem_capacity_bytes, 64 * _MIB))
    except Exception:
        return 64 * _MIB


def _pick_divisor_tile(dim_p, cap):
    """Largest multiple of 128 dividing dim_p (itself a multiple of 128), <= cap."""
    if dim_p <= cap:
        return dim_p
    t = max(_LANE, cap - cap % _LANE)
    while dim_p % t:
        t -= _LANE
    return t


# ---------------------------------------------------------------------------
# Fused MLP kernel: all layers computed on one VMEM-resident batch tile.
# refs layout: (x_ref, w0, b0, w1, b1, ..., o_ref)
# ---------------------------------------------------------------------------
def _fused_mlp_kernel(*refs, n_layers, relu_flags):
    x_ref = refs[0]
    o_ref = refs[-1]
    layer_refs = refs[1:-1]

    h = x_ref[...]
    for i in range(n_layers):
        w = layer_refs[2 * i][...]
        b = layer_refs[2 * i + 1][...]          # (1, Np) f32 — broadcasts over rows
        # MXU matmul with f32 accumulation; epilogue (bias + ReLU) in f32.
        h = jnp.dot(h.astype(w.dtype), w, preferred_element_type=jnp.float32)
        h = h + b.astype(jnp.float32)
        if relu_flags[i]:
            h = jnp.maximum(h, 0.0)
    o_ref[...] = h.astype(o_ref.dtype)


# ---------------------------------------------------------------------------
# Per-layer fallback kernel: (M, N, K)-tiled matmul + bias(+ReLU) epilogue.
# ---------------------------------------------------------------------------
def _tiled_linear_kernel(x_ref, w_ref, b_ref, o_ref, acc_ref, *, apply_relu):
    k = pl.program_id(2)

    @pl.when(k == 0)
    def _():
        acc_ref[...] = jnp.zeros_like(acc_ref)

    acc_ref[...] += jnp.dot(x_ref[...], w_ref[...],
                            preferred_element_type=jnp.float32)

    @pl.when(k == pl.num_programs(2) - 1)
    def _():
        h = acc_ref[...] + b_ref[...].astype(jnp.float32)
        if apply_relu:
            h = jnp.maximum(h, 0.0)
        o_ref[...] = h.astype(o_ref.dtype)


# ---------------------------------------------------------------------------
# One-time parameter preparation (pad to lane-dense shapes, cast to bf16).
# Call once, reuse the returned dict for every forward pass.
# ---------------------------------------------------------------------------
def prepare_autoencoder_params(enc_params, dec_params, *,
                               compute_dtype=jnp.bfloat16):
    params = list(enc_params) + list(dec_params)
    relu_flags = tuple(
        [True] * (len(enc_params) - 1) + [False] +
        [True] * (len(dec_params) - 1) + [False])

    dims = [params[0][0].shape[0]] + [w.shape[1] for (w, _) in params]
    pdims = [_round_up(d, _LANE) for d in dims]

    padded = []
    for li, (w, b) in enumerate(params):
        K, N = w.shape
        Kp, Np = pdims[li], pdims[li + 1]
        wp = jnp.zeros((Kp, Np), compute_dtype).at[:K, :N].set(
            w.astype(compute_dtype))
        bp = jnp.zeros((1, Np), jnp.float32).at[0, :N].set(
            b.astype(jnp.float32))
        padded.append((jax.device_put(wp), jax.device_put(bp)))

    return {
        "params": padded,
        "relu_flags": relu_flags,
        "dims": tuple(dims),
        "pdims": tuple(pdims),
        "compute_dtype": jnp.dtype(compute_dtype),
    }


# ---------------------------------------------------------------------------
# Fallback: per-layer tiled pipeline (used when weights can't all stay in VMEM).
# ---------------------------------------------------------------------------
def _layerwise_forward(xp, params, relu_flags, cdt, out_dtype, tile_m, budget):
    h = xp
    n = len(params)
    for li, (wp, bp) in enumerate(params):
        Kp, Np = wp.shape
        layer_out_dtype = out_dtype if li == n - 1 else cdt
        tk = _pick_divisor_tile(Kp, 512)
        tn = _pick_divisor_tile(Np, 512)
        Mp = h.shape[0]
        tm = tile_m if Mp % tile_m == 0 else Mp
        grid = (Mp // tm, Np // tn, Kp // tk)
        footprint = (2 * (tm * tk * jnp.dtype(cdt).itemsize
                          + tk * tn * wp.dtype.itemsize
                          + tm * tn * jnp.dtype(layer_out_dtype).itemsize)
                     + tm * tn * 4)
        vmem_limit = int(min(max(footprint + 8 * _MIB, 32 * _MIB), budget))
        h = pl.pallas_call(
            functools.partial(_tiled_linear_kernel, apply_relu=relu_flags[li]),
            out_shape=jax.ShapeDtypeStruct((Mp, Np), layer_out_dtype),
            grid=grid,
            in_specs=[pl.BlockSpec((tm, tk), lambda i, j, k: (i, k)),
                      pl.BlockSpec((tk, tn), lambda i, j, k: (k, j)),
                      pl.BlockSpec((1, tn), lambda i, j, k: (0, j))],
            out_specs=pl.BlockSpec((tm, tn), lambda i, j, k: (i, j)),
            scratch_shapes=[pltpu.VMEM((tm, tn), jnp.float32)],
            compiler_params=pltpu.CompilerParams(
                dimension_semantics=("parallel", "parallel", "arbitrary"),
                vmem_limit_bytes=vmem_limit),
        )(h.astype(cdt), wp, bp)
    return h


# ---------------------------------------------------------------------------
# Forward pass: ONE fused pallas_call (weights resident) when VMEM allows.
# ---------------------------------------------------------------------------
def autoencoder_forward(prepared, x, *, out_dtype=jnp.float32,
                        force_fallback=False):
    dims = prepared["dims"]
    pdims = prepared["pdims"]
    params = prepared["params"]
    relu_flags = prepared["relu_flags"]
    cdt = prepared["compute_dtype"]

    M, K0 = x.shape
    assert K0 == dims[0], f"expected input width {dims[0]}, got {K0}"

    sub = _sublane_mult(cdt)
    c_bytes = jnp.dtype(cdt).itemsize
    o_bytes = jnp.dtype(out_dtype).itemsize

    # Resident parameter footprint (worst case: double buffered).
    w_bytes = sum(int(w.size) * w.dtype.itemsize + int(b.size) * b.dtype.itemsize
                  for (w, b) in params)
    budget = _vmem_budget_bytes()

    # Bytes per batch row: double-buffered input/output tiles + f32 temporaries.
    per_row = (2 * pdims[0] * c_bytes + 2 * pdims[-1] * o_bytes
               + 3 * max(pdims) * 4)
    avail = budget - 2 * w_bytes - 8 * _MIB
    if avail >= 1024 * per_row:
        cap = 1024
    elif avail > 0:
        cap = max(sub, (avail // per_row) // sub * sub)
    else:
        cap = sub

    # Batch tile: >=2 grid steps when the batch allows (v7x megacore), rounded
    # to the dtype-native sublane multiple, capped by the VMEM budget.
    if M <= sub:
        tile_m = sub
    else:
        half = _round_up(-(-M // 2), sub)
        tile_m = max(sub, min(cap, half))
    Mp = _round_up(M, tile_m)

    fused_ok = (not force_fallback) and \
        (2 * w_bytes + tile_m * per_row + 4 * _MIB <= budget)

    # Pad the batch input once per call (weights were pre-padded in `prepare`).
    xp = jnp.zeros((Mp, pdims[0]), cdt).at[:M, :K0].set(x.astype(cdt))

    if fused_ok:
        footprint = 2 * w_bytes + tile_m * per_row
        vmem_limit = int(min(max(footprint + 8 * _MIB, 32 * _MIB), budget))

        def call(single_buffer_weights):
            in_specs = [pl.BlockSpec((tile_m, pdims[0]), lambda i: (i, 0))]
            flat = [xp]
            for wp, bp in params:
                Kp, Np = wp.shape
                if single_buffer_weights:
                    # Constant index_map -> no need to double-buffer.
                    w_spec = pl.BlockSpec((Kp, Np), lambda i: (0, 0),
                                          pipeline_mode=pl.Buffered(1))
                    b_spec = pl.BlockSpec((1, Np), lambda i: (0, 0),
                                          pipeline_mode=pl.Buffered(1))
                else:
                    w_spec = pl.BlockSpec((Kp, Np), lambda i: (0, 0))
                    b_spec = pl.BlockSpec((1, Np), lambda i: (0, 0))
                in_specs += [w_spec, b_spec]
                flat += [wp, bp]
            out_specs = pl.BlockSpec((tile_m, pdims[-1]), lambda i: (i, 0))
            kernel = functools.partial(_fused_mlp_kernel, n_layers=len(params),
                                       relu_flags=relu_flags)
            return pl.pallas_call(
                kernel,
                out_shape=jax.ShapeDtypeStruct((Mp, pdims[-1]), out_dtype),
                grid=(Mp // tile_m,),
                in_specs=in_specs,
                out_specs=out_specs,
                compiler_params=pltpu.CompilerParams(
                    dimension_semantics=("parallel",),
                    vmem_limit_bytes=vmem_limit),
            )(*flat)

        try:
            out_padded = call(True)       # single-buffered resident weights
        except Exception:
            out_padded = call(False)      # graceful fallback if unsupported
    else:
        out_padded = _layerwise_forward(xp, params, relu_flags, cdt, out_dtype,
                                        tile_m, budget)

    # Slice back to true batch / feature width.
    return out_padded[:M, :dims[-1]]


# ---------------------------------------------------------------------------
# Parameter init (deterministic, mimics PyTorch nn.Linear uniform init)
# ---------------------------------------------------------------------------
def init_mlp_params(key, dims):
    params = []
    for i in range(1, len(dims)):
        key, kw, kb = jax.random.split(key, 3)
        fan_in = dims[i - 1]
        bound = 1.0 / (fan_in ** 0.5)
        w = jax.random.uniform(kw, (dims[i - 1], dims[i]),
                               jnp.float32, -bound, bound)
        b = jax.random.uniform(kb, (dims[i],), jnp.float32, -bound, bound)
        params.append((w, b))
    return key, params


# Pure-JAX reference of the same math for a correctness check.
def ref_mlp(params, x):
    n = len(params)
    for idx, (w, b) in enumerate(params):
        x = x @ w + b
        if idx < n - 1:
            x = jnp.maximum(x, 0.0)
    return x


if __name__ == "__main__":
    # Shapes consistent with Autoencoder([64, 32, 16], [16, 32, 64]).
    encoder_dims = [64, 32, 16]
    decoder_dims = [16, 32, 64]
    batch = 8

    key = jax.random.PRNGKey(0)
    key, enc_params = init_mlp_params(key, encoder_dims)
    key, dec_params = init_mlp_params(key, decoder_dims)
    key, kx = jax.random.split(key)
    x = jax.random.normal(kx, (batch, encoder_dims[0]), jnp.float32)

    ref = ref_mlp(dec_params, ref_mlp(enc_params, x))

    # f32 path: tight correctness check.
    prep_f32 = prepare_autoencoder_params(enc_params, dec_params,
                                          compute_dtype=jnp.float32)
    out_f32 = jax.block_until_ready(autoencoder_forward(prep_f32, x))
    assert out_f32.shape == (batch, decoder_dims[-1])
    assert jnp.allclose(out_f32, ref, atol=1e-5, rtol=1e-5), "f32 fused mismatch"

    # bf16 (default fast MXU path): looser tolerance — inter-layer activations
    # are re-quantized to bf16, per-layer accumulation stays f32.
    prep_bf16 = prepare_autoencoder_params(enc_params, dec_params)
    out_bf16 = jax.block_until_ready(autoencoder_forward(prep_bf16, x))
    assert out_bf16.shape == (batch, decoder_dims[-1])
    assert jnp.allclose(out_bf16, ref, atol=5e-2, rtol=5e-2), "bf16 fused mismatch"

    # Exercise the per-layer tiled fallback path (auto-selected for nets whose
    # weights exceed the per-generation VMEM budget).
    out_fb = jax.block_until_ready(
        autoencoder_forward(prep_f32, x, force_fallback=True))
    assert jnp.allclose(out_fb, ref, atol=1e-5, rtol=1e-5), "fallback mismatch"

    print("KERNEL_OK")
</pallas_src>

<mosaic_0001>
module attributes {stable_mosaic.version = 11 : i64} {
  func.func @_fused_mlp_kernel(%arg0: i32, %arg1: memref<8x128xf32, #tpu.memory_space<vmem>>, %arg2: memref<128x128xf32, #tpu.memory_space<vmem>>, %arg3: memref<1x128xf32, #tpu.memory_space<vmem>>, %arg4: memref<128x128xf32, #tpu.memory_space<vmem>>, %arg5: memref<1x128xf32, #tpu.memory_space<vmem>>, %arg6: memref<128x128xf32, #tpu.memory_space<vmem>>, %arg7: memref<1x128xf32, #tpu.memory_space<vmem>>, %arg8: memref<128x128xf32, #tpu.memory_space<vmem>>, %arg9: memref<1x128xf32, #tpu.memory_space<vmem>>, %arg10: memref<8x128xf32, #tpu.memory_space<vmem>>) attributes {dimension_semantics = [#tpu.dimension_semantics<parallel>], iteration_bounds = array<i64: 1>, scalar_prefetch = 0 : i64, scratch_operands = 0 : i64, tpu.core_type = #tpu.core_type<tc>, window_params = [{transform_indices = @transform_0, window_bounds = array<i64: 8, 128>}, {pipeline_mode = #tpu.pipeline_mode<synchronous>, transform_indices = @transform_1, window_bounds = array<i64: 128, 128>}, {pipeline_mode = #tpu.pipeline_mode<synchronous>, transform_indices = @transform_2, window_bounds = array<i64: 1, 128>}, {pipeline_mode = #tpu.pipeline_mode<synchronous>, transform_indices = @transform_3, window_bounds = array<i64: 128, 128>}, {pipeline_mode = #tpu.pipeline_mode<synchronous>, transform_indices = @transform_4, window_bounds = array<i64: 1, 128>}, {pipeline_mode = #tpu.pipeline_mode<synchronous>, transform_indices = @transform_5, window_bounds = array<i64: 128, 128>}, {pipeline_mode = #tpu.pipeline_mode<synchronous>, transform_indices = @transform_6, window_bounds = array<i64: 1, 128>}, {pipeline_mode = #tpu.pipeline_mode<synchronous>, transform_indices = @transform_7, window_bounds = array<i64: 128, 128>}, {pipeline_mode = #tpu.pipeline_mode<synchronous>, transform_indices = @transform_8, window_bounds = array<i64: 1, 128>}, {transform_indices = @transform_9, window_bounds = array<i64: 8, 128>}]} {
    %c0 = arith.constant 0 : index
    %c0_0 = arith.constant 0 : index
    %0 = vector.load %arg1[%c0, %c0_0] : memref<8x128xf32, #tpu.memory_space<vmem>>, vector<8x128xf32>
    %c0_1 = arith.constant 0 : index
    %c0_2 = arith.constant 0 : index
    %1 = vector.load %arg2[%c0_1, %c0_2] : memref<128x128xf32, #tpu.memory_space<vmem>>, vector<128x128xf32>
    %c0_3 = arith.constant 0 : index
    %c0_4 = arith.constant 0 : index
    %2 = vector.load %arg3[%c0_3, %c0_4] : memref<1x128xf32, #tpu.memory_space<vmem>>, vector<1x128xf32>
    %cst = arith.constant dense<0.000000e+00> : vector<8x128xf32>
    %3 = tpu.matmul %0, %1, %cst {dimension_numbers = #tpu.dot_dimension_numbers<[1], [0], [0], [1], [0, 0, 1, 1], [], []>} : vector<8x128xf32>, vector<128x128xf32>, vector<8x128xf32> -> vector<8x128xf32>
    %4 = vector.broadcast %2 : vector<1x128xf32> to vector<8x128xf32>
    %5 = arith.addf %3, %4 : vector<8x128xf32>
    %cst_5 = arith.constant 0.000000e+00 : f32
    %6 = vector.broadcast %cst_5 : f32 to vector<8x128xf32>
    %7 = arith.maximumf %5, %6 : vector<8x128xf32>
    %c0_6 = arith.constant 0 : index
    %c0_7 = arith.constant 0 : index
    %8 = vector.load %arg4[%c0_6, %c0_7] : memref<128x128xf32, #tpu.memory_space<vmem>>, vector<128x128xf32>
    %c0_8 = arith.constant 0 : index
    %c0_9 = arith.constant 0 : index
    %9 = vector.load %arg5[%c0_8, %c0_9] : memref<1x128xf32, #tpu.memory_space<vmem>>, vector<1x128xf32>
    %cst_10 = arith.constant dense<0.000000e+00> : vector<8x128xf32>
    %10 = tpu.matmul %7, %8, %cst_10 {dimension_numbers = #tpu.dot_dimension_numbers<[1], [0], [0], [1], [0, 0, 1, 1], [], []>} : vector<8x128xf32>, vector<128x128xf32>, vector<8x128xf32> -> vector<8x128xf32>
    %11 = vector.broadcast %9 : vector<1x128xf32> to vector<8x128xf32>
    %12 = arith.addf %10, %11 : vector<8x128xf32>
    %c0_11 = arith.constant 0 : index
    %c0_12 = arith.constant 0 : index
    %13 = vector.load %arg6[%c0_11, %c0_12] : memref<128x128xf32, #tpu.memory_space<vmem>>, vector<128x128xf32>
    %c0_13 = arith.constant 0 : index
    %c0_14 = arith.constant 0 : index
    %14 = vector.load %arg7[%c0_13, %c0_14] : memref<1x128xf32, #tpu.memory_space<vmem>>, vector<1x128xf32>
    %cst_15 = arith.constant dense<0.000000e+00> : vector<8x128xf32>
    %15 = tpu.matmul %12, %13, %cst_15 {dimension_numbers = #tpu.dot_dimension_numbers<[1], [0], [0], [1], [0, 0, 1, 1], [], []>} : vector<8x128xf32>, vector<128x128xf32>, vector<8x128xf32> -> vector<8x128xf32>
    %16 = vector.broadcast %14 : vector<1x128xf32> to vector<8x128xf32>
    %17 = arith.addf %15, %16 : vector<8x128xf32>
    %cst_16 = arith.constant 0.000000e+00 : f32
    %18 = vector.broadcast %cst_16 : f32 to vector<8x128xf32>
    %19 = arith.maximumf %17, %18 : vector<8x128xf32>
    %c0_17 = arith.constant 0 : index
    %c0_18 = arith.constant 0 : index
    %20 = vector.load %arg8[%c0_17, %c0_18] : memref<128x128xf32, #tpu.memory_space<vmem>>, vector<128x128xf32>
    %c0_19 = arith.constant 0 : index
    %c0_20 = arith.constant 0 : index
    %21 = vector.load %arg9[%c0_19, %c0_20] : memref<1x128xf32, #tpu.memory_space<vmem>>, vector<1x128xf32>
    %cst_21 = arith.constant dense<0.000000e+00> : vector<8x128xf32>
    %22 = tpu.matmul %19, %20, %cst_21 {dimension_numbers = #tpu.dot_dimension_numbers<[1], [0], [0], [1], [0, 0, 1, 1], [], []>} : vector<8x128xf32>, vector<128x128xf32>, vector<8x128xf32> -> vector<8x128xf32>
    %23 = vector.broadcast %21 : vector<1x128xf32> to vector<8x128xf32>
    %24 = arith.addf %22, %23 : vector<8x128xf32>
    %c0_22 = arith.constant 0 : index
    %c0_23 = arith.constant 0 : index
    %25 = vector.load %arg10[%c0_22, %c0_23] : memref<8x128xf32, #tpu.memory_space<vmem>>, vector<8x128xf32>
    tpu.vector_store %arg10[%c0_22, %c0_23], %24 {strides = array<i32>} : memref<8x128xf32, #tpu.memory_space<vmem>>, vector<8x128xf32>,
    return
  }
  func.func @transform_0(%arg0: i32) -> (i32, i32) {
    %c0_i32 = arith.constant 0 : i32
    %c0_i32_0 = arith.constant 0 : i32
    return %arg0, %c0_i32 : i32, i32
  }
  func.func @transform_1(%arg0: i32) -> (i32, i32) {
    %c0_i32 = arith.constant 0 : i32
    %c0_i32_0 = arith.constant 0 : i32
    %c0_i32_1 = arith.constant 0 : i32
    return %c0_i32, %c0_i32_0 : i32, i32
  }
  func.func @transform_2(%arg0: i32) -> (i32, i32) {
    %c0_i32 = arith.constant 0 : i32
    %c0_i32_0 = arith.constant 0 : i32
    %c0_i32_1 = arith.constant 0 : i32
    return %c0_i32, %c0_i32_0 : i32, i32
  }
  func.func @transform_3(%arg0: i32) -> (i32, i32) {
    %c0_i32 = arith.constant 0 : i32
    %c0_i32_0 = arith.constant 0 : i32
    %c0_i32_1 = arith.constant 0 : i32
    return %c0_i32, %c0_i32_0 : i32, i32
  }
  func.func @transform_4(%arg0: i32) -> (i32, i32) {
    %c0_i32 = arith.constant 0 : i32
    %c0_i32_0 = arith.constant 0 : i32
    %c0_i32_1 = arith.constant 0 : i32
    return %c0_i32, %c0_i32_0 : i32, i32
  }
  func.func @transform_5(%arg0: i32) -> (i32, i32) {
    %c0_i32 = arith.constant 0 : i32
    %c0_i32_0 = arith.constant 0 : i32
    %c0_i32_1 = arith.constant 0 : i32
    return %c0_i32, %c0_i32_0 : i32, i32
  }
  func.func @transform_6(%arg0: i32) -> (i32, i32) {
    %c0_i32 = arith.constant 0 : i32
    %c0_i32_0 = arith.constant 0 : i32
    %c0_i32_1 = arith.constant 0 : i32
    return %c0_i32, %c0_i32_0 : i32, i32
  }
  func.func @transform_7(%arg0: i32) -> (i32, i32) {
    %c0_i32 = arith.constant 0 : i32
    %c0_i32_0 = arith.constant 0 : i32
    %c0_i32_1 = arith.constant 0 : i32
    return %c0_i32, %c0_i32_0 : i32, i32
  }
  func.func @transform_8(%arg0: i32) -> (i32, i32) {
    %c0_i32 = arith.constant 0 : i32
    %c0_i32_0 = arith.constant 0 : i32
    %c0_i32_1 = arith.constant 0 : i32
    return %c0_i32, %c0_i32_0 : i32, i32
  }
  func.func @transform_9(%arg0: i32) -> (i32, i32) {
    %c0_i32 = arith.constant 0 : i32
    %c0_i32_0 = arith.constant 0 : i32
    return %arg0, %c0_i32 : i32, i32
  }
}

module attributes {stable_mosaic.version = 11 : i64} {
  func.func @_fused_mlp_kernel(%arg0: i32, %arg1: memref<8x128xf32, #tpu.memory_space<vmem>>, %arg2: memref<128x128xf32, #tpu.memory_space<vmem>>, %arg3: memref<1x128xf32, #tpu.memory_space<vmem>>, %arg4: memref<128x128xf32, #tpu.memory_space<vmem>>, %arg5: memref<1x128xf32, #tpu.memory_space<vmem>>, %arg6: memref<128x128xf32, #tpu.memory_space<vmem>>, %arg7: memref<1x128xf32, #tpu.memory_space<vmem>>, %arg8: memref<128x128xf32, #tpu.memory_space<vmem>>, %arg9: memref<1x128xf32, #tpu.memory_space<vmem>>, %arg10: memref<8x128xf32, #tpu.memory_space<vmem>>) attributes {dimension_semantics = [#tpu.dimension_semantics<parallel>], iteration_bounds = array<i64: 1>, scalar_prefetch = 0 : i64, scratch_operands = 0 : i64, tpu.core_type = #tpu.core_type<tc>, window_params = [{transform_indices = @transform_0, window_bounds = array<i64: 8, 128>}, {pipeline_mode = #tpu.pipeline_mode<synchronous>, transform_indices = @transform_1, window_bounds = array<i64: 128, 128>}, {pipeline_mode = #tpu.pipeline_mode<synchronous>, transform_indices = @transform_2, window_bounds = array<i64: 1, 128>}, {pipeline_mode = #tpu.pipeline_mode<synchronous>, transform_indices = @transform_3, window_bounds = array<i64: 128, 128>}, {pipeline_mode = #tpu.pipeline_mode<synchronous>, transform_indices = @transform_4, window_bounds = array<i64: 1, 128>}, {pipeline_mode = #tpu.pipeline_mode<synchronous>, transform_indices = @transform_5, window_bounds = array<i64: 128, 128>}, {pipeline_mode = #tpu.pipeline_mode<synchronous>, transform_indices = @transform_6, window_bounds = array<i64: 1, 128>}, {pipeline_mode = #tpu.pipeline_mode<synchronous>, transform_indices = @transform_7, window_bounds = array<i64: 128, 128>}, {pipeline_mode = #tpu.pipeline_mode<synchronous>, transform_indices = @transform_8, window_bounds = array<i64: 1, 128>}, {transform_indices = @transform_9, window_bounds = array<i64: 8, 128>}]} {
    %c0 = arith.constant 0 : index
    %c0_0 = arith.constant 0 : index
    %0 = vector.load %arg1[%c0, %c0_0] : memref<8x128xf32, #tpu.memory_space<vmem>>, vector<8x128xf32>
    %c0_1 = arith.constant 0 : index
    %c0_2 = arith.constant 0 : index
    %1 = vector.load %arg2[%c0_1, %c0_2] : memref<128x128xf32, #tpu.memory_space<vmem>>, vector<128x128xf32>
    %c0_3 = arith.constant 0 : index
    %c0_4 = arith.constant 0 : index
    %2 = vector.load %arg3[%c0_3, %c0_4] : memref<1x128xf32, #tpu.memory_space<vmem>>, vector<1x128xf32>
    %cst = arith.constant dense<0.000000e+00> : vector<8x128xf32>
    %3 = tpu.matmul %0, %1, %cst {dimension_numbers = #tpu.dot_dimension_numbers<[1], [0], [0], [1], [0, 0, 1, 1], [], []>} : vector<8x128xf32>, vector<128x128xf32>, vector<8x128xf32> -> vector<8x128xf32>
    %4 = vector.broadcast %2 : vector<1x128xf32> to vector<8x128xf32>
    %5 = arith.addf %3, %4 : vector<8x128xf32>
    %cst_5 = arith.constant 0.000000e+00 : f32
    %6 = vector.broadcast %cst_5 : f32 to vector<8x128xf32>
    %7 = arith.maximumf %5, %6 : vector<8x128xf32>
    %c0_6 = arith.constant 0 : index
    %c0_7 = arith.constant 0 : index
    %8 = vector.load %arg4[%c0_6, %c0_7] : memref<128x128xf32, #tpu.memory_space<vmem>>, vector<128x128xf32>
    %c0_8 = arith.constant 0 : index
    %c0_9 = arith.constant 0 : index
    %9 = vector.load %arg5[%c0_8, %c0_9] : memref<1x128xf32, #tpu.memory_space<vmem>>, vector<1x128xf32>
    %cst_10 = arith.constant dense<0.000000e+00> : vector<8x128xf32>
    %10 = tpu.matmul %7, %8, %cst_10 {dimension_numbers = #tpu.dot_dimension_numbers<[1], [0], [0], [1], [0, 0, 1, 1], [], []>} : vector<8x128xf32>, vector<128x128xf32>, vector<8x128xf32> -> vector<8x128xf32>
    %11 = vector.broadcast %9 : vector<1x128xf32> to vector<8x128xf32>
    %12 = arith.addf %10, %11 : vector<8x128xf32>
    %c0_11 = arith.constant 0 : index
    %c0_12 = arith.constant 0 : index
    %13 = vector.load %arg6[%c0_11, %c0_12] : memref<128x128xf32, #tpu.memory_space<vmem>>, vector<128x128xf32>
    %c0_13 = arith.constant 0 : index
    %c0_14 = arith.constant 0 : index
    %14 = vector.load %arg7[%c0_13, %c0_14] : memref<1x128xf32, #tpu.memory_space<vmem>>, vector<1x128xf32>
    %cst_15 = arith.constant dense<0.000000e+00> : vector<8x128xf32>
    %15 = tpu.matmul %12, %13, %cst_15 {dimension_numbers = #tpu.dot_dimension_numbers<[1], [0], [0], [1], [0, 0, 1, 1], [], []>} : vector<8x128xf32>, vector<128x128xf32>, vector<8x128xf32> -> vector<8x128xf32>
    %16 = vector.broadcast %14 : vector<1x128xf32> to vector<8x128xf32>
    %17 = arith.addf %15, %16 : vector<8x128xf32>
    %cst_16 = arith.constant 0.000000e+00 : f32
    %18 = vector.broadcast %cst_16 : f32 to vector<8x128xf32>
    %19 = arith.maximumf %17, %18 : vector<8x128xf32>
    %c0_17 = arith.constant 0 : index
    %c0_18 = arith.constant 0 : index
    %20 = vector.load %arg8[%c0_17, %c0_18] : memref<128x128xf32, #tpu.memory_space<vmem>>, vector<128x128xf32>
    %c0_19 = arith.constant 0 : index
    %c0_20 = arith.constant 0 : index
    %21 = vector.load %arg9[%c0_19, %c0_20] : memref<1x128xf32, #tpu.memory_space<vmem>>, vector<1x128xf32>
    %cst_21 = arith.constant dense<0.000000e+00> : vector<8x128xf32>
    %22 = tpu.matmul %19, %20, %cst_21 {dimension_numbers = #tpu.dot_dimension_numbers<[1], [0], [0], [1], [0, 0, 1, 1], [], []>} : vector<8x128xf32>, vector<128x128xf32>, vector<8x128xf32> -> vector<8x128xf32>
    %23 = vector.broadcast %21 : vector<1x128xf32> to vector<8x128xf32>
    %24 = arith.addf %22, %23 : vector<8x128xf32>
    %c0_22 = arith.constant 0 : index
    %c0_23 = arith.constant 0 : index
    %25 = vector.load %arg10[%c0_22, %c0_23] : memref<8x128xf32, #tpu.memory_space<vmem>>, vector<8x128xf32>
    tpu.vector_store %arg10[%c0_22, %c0_23], %24 {strides = array<i32>} : memref<8x128xf32, #tpu.memory_space<vmem>>, vector<8x128xf32>,
    return
  }
  func.func @transform_0(%arg0: i32) -> (i32, i32) {
    %c0_i32 = arith.constant 0 : i32
    %c0_i32_0 = arith.constant 0 : i32
    return %arg0, %c0_i32 : i32, i32
  }
  func.func @transform_1(%arg0: i32) -> (i32, i32) {
    %c0_i32 = arith.constant 0 : i32
    %c0_i32_0 = arith.constant 0 : i32
    %c0_i32_1 = arith.constant 0 : i32
    return %c0_i32, %c0_i32_0 : i32, i32
  }
  func.func @transform_2(%arg0: i32) -> (i32, i32) {
    %c0_i32 = arith.constant 0 : i32
    %c0_i32_0 = arith.constant 0 : i32
    %c0_i32_1 = arith.constant 0 : i32
    return %c0_i32, %c0_i32_0 : i32, i32
  }
  func.func @transform_3(%arg0: i32) -> (i32, i32) {
    %c0_i32 = arith.constant 0 : i32
    %c0_i32_0 = arith.constant 0 : i32
    %c0_i32_1 = arith.constant 0 : i32
    return %c0_i32, %c0_i32_0 : i32, i32
  }
  func.func @transform_4(%arg0: i32) -> (i32, i32) {
    %c0_i32 = arith.constant 0 : i32
    %c0_i32_0 = arith.constant 0 : i32
    %c0_i32_1 = arith.constant 0 : i32
    return %c0_i32, %c0_i32_0 : i32, i32
  }
  func.func @transform_5(%arg0: i32) -> (i32, i32) {
    %c0_i32 = arith.constant 0 : i32
    %c0_i32_0 = arith.constant 0 : i32
    %c0_i32_1 = arith.constant 0 : i32
    return %c0_i32, %c0_i32_0 : i32, i32
  }
  func.func @transform_6(%arg0: i32) -> (i32, i32) {
    %c0_i32 = arith.constant 0 : i32
    %c0_i32_0 = arith.constant 0 : i32
    %c0_i32_1 = arith.constant 0 : i32
    return %c0_i32, %c0_i32_0 : i32, i32
  }
  func.func @transform_7(%arg0: i32) -> (i32, i32) {
    %c0_i32 = arith.constant 0 : i32
    %c0_i32_0 = arith.constant 0 : i32
    %c0_i32_1 = arith.constant 0 : i32
    return %c0_i32, %c0_i32_0 : i32, i32
  }
  func.func @transform_8(%arg0: i32) -> (i32, i32) {
    %c0_i32 = arith.constant 0 : i32
    %c0_i32_0 = arith.constant 0 : i32
    %c0_i32_1 = arith.constant 0 : i32
    return %c0_i32, %c0_i32_0 : i32, i32
  }
  func.func @transform_9(%arg0: i32) -> (i32, i32) {
    %c0_i32 = arith.constant 0 : i32
    %c0_i32_0 = arith.constant 0 : i32
    return %arg0, %c0_i32 : i32, i32
  }
}

</mosaic_0001>

<bundles_post_ra>
// kernel: tpu_custom_call.1
= control target key start
LH: loop header
LB: loop body
LE: loop exit
PB: predicated region body
PF: predicated region fallthrough
CT: control target
= control target key end

     0   :  { %14 = vsyncpa [#allocation3], 0  ;;  %s1148_s0 = inlined_call_operand.hbm [shape: f32[8,128], index: 0, kind: input, shape index: {}]   ;;  %s1149_s1 = inlined_call_operand.hbm [shape: f32[128,128], index: 1, kind: input, shape index: {}]   ;;  %s1150_s2 = inlined_call_operand.vmem [shape: f32[1,128], index: 2, kind: input, shape index: {}]   ;;  %s1151_s3 = inlined_call_operand.hbm [shape: f32[128,128], index: 3, kind: input, shape index: {}]   ;;  %s1152_s4 = inlined_call_operand.vmem [shape: f32[1,128], index: 4, kind: input, shape index: {}]   ;;  %s1153_s5 = inlined_call_operand.hbm [shape: f32[128,128], index: 5, kind: input, shape index: {}]   ;;  %s1154_s6 = inlined_call_operand.vmem [shape: f32[1,128], index: 6, kind: input, shape index: {}]   ;;  %s1155_s7 = inlined_call_operand.hbm [shape: f32[128,128], index: 7, kind: input, shape index: {}]   ;;  %s1156_s8 = inlined_call_operand.vmem [shape: f32[1,128], index: 8, kind: input, shape index: {}]   ;;  %s1157_s9 = inlined_call_operand.hbm [shape: f32[8,128], index: 9, kind: output, shape index: {}]  }
   0x1   :  { %15 = vsyncpa [#allocation6], 0 }
   0x2   :  { %16 = vsyncpa [#allocation9], 0 }
   0x3   :  { %17 = vsyncpa [#allocation4], 0  ;;  %s951_s30 = smov [#allocation5]   ;;  %s811_s13 = scalar_lea.hbm %s1149_s1, 2048 }
   0x4   :  { %s33_s10 = sshll.u32 %s951_s30, 4  ;;  %p812_p0 = scmp.ne.s32.totalorder %s1149_s1, %s811_s13  ;;  %s34_s10 = int_to_ptr.vmem [resolvable:$true] %s33_s10 }
   0x5   :  { %p815_p1 = scmp.lt.u32.totalorder %s811_s13, %s1149_s1 }
   0x7   :  { %p817_p2 = pnand %p815_p1, %p812_p0 }
   0x9   :  { %820 = shalt.err (!%p817_p2)
}
   0xa   :  { %s821_s18 = scalar_lea.vmem %s34_s10, 2048  ;;  %p826_p4 = scmp.lt.s32.totalorder %s34_s10, %s34_s10 }
   0xb   :  { %p822_p3 = scmp.ne.s32.totalorder %s34_s10, %s821_s18  ;;  %p827_p5 = scmp.lt.s32.totalorder %s821_s18, %s821_s18 }
   0xd   :  { %p828_p6 = por %p827_p5, %p826_p4 }
   0xf   :  { %p829_p7 = pnand %p828_p6, %p822_p3 }
  0x11   :  { %832 = shalt.err (!%p829_p7)
}
  0x12   :  { %s952_s19 = smov 128   ;;  %s953_s20 = smov 8  }
  0x13   :  { %39 = dma.hbm_to_vmem [thread:$0]  %s1149_s1, 2048, %s34_s10, [#allocation6], %s952_s19, %s952_s19, %s953_s20  }
  0x14   :  { %s954_s23 = smov [#allocation8]   ;;  %s955_s25 = smov [#allocation2]  }
  0x15   :  { %s61_s24 = sshll.u32 %s954_s23, 4  ;;  %s24_s26 = sshll.u32 %s955_s25, 4  ;;  %s62_s24 = int_to_ptr.vmem [resolvable:$true] %s61_s24  ;;  %s25_s26 = int_to_ptr.vmem [resolvable:$true] %s24_s26 }
  0x16   :  { %s833_s29 = scalar_lea.hbm %s1153_s5, 2048 }
  0x17   :  { %p834_p8 = scmp.ne.s32.totalorder %s1153_s5, %s833_s29  ;;  %p837_p9 = scmp.lt.u32.totalorder %s833_s29, %s1153_s5 }
  0x19   :  { %p839_p10 = pnand %p837_p9, %p834_p8 }
  0x1b   :  { %842 = shalt.err (!%p839_p10)
}
  0x1c   :  { %s843_s1 = scalar_lea.vmem %s62_s24, 2048  ;;  %p848_p12 = scmp.lt.s32.totalorder %s62_s24, %s62_s24 }
  0x1d   :  { %p844_p11 = scmp.ne.s32.totalorder %s62_s24, %s843_s1  ;;  %p849_p13 = scmp.lt.s32.totalorder %s843_s1, %s843_s1 }
  0x1f   :  { %p850_p0 = por %p849_p13, %p848_p12 }
  0x21   :  { %p851_p1 = pnand %p850_p0, %p844_p11 }
  0x23   :  { %854 = shalt.err (!%p851_p1)
}
  0x24   :  { %67 = dma.hbm_to_vmem [thread:$0]  %s1153_s5, 2048, %s62_s24, [#allocation9], %s952_s19, %s952_s19, %s953_s20  }
  0x25   :  { %s855_s17 = scalar_lea.hbm %s1148_s0, 128 }
  0x26   :  { %p856_p2 = scmp.ne.s32.totalorder %s1148_s0, %s855_s17  ;;  %p859_p3 = scmp.lt.u32.totalorder %s855_s17, %s1148_s0 }
  0x28   :  { %p861_p4 = pnand %p859_p3, %p856_p2 }
  0x2a   :  { %864 = shalt.err (!%p861_p4)
}
  0x2b   :  { %s865_s25 = scalar_lea.vmem %s25_s26, 128  ;;  %p870_p6 = scmp.lt.s32.totalorder %s25_s26, %s25_s26 }
  0x2c   :  { %p866_p5 = scmp.ne.s32.totalorder %s25_s26, %s865_s25  ;;  %p871_p7 = scmp.lt.s32.totalorder %s865_s25, %s865_s25 }
  0x2e   :  { %p872_p8 = por %p871_p7, %p870_p6 }
  0x30   :  { %p873_p9 = pnand %p872_p8, %p866_p5 }
  0x32   :  { %876 = shalt.err (!%p873_p9)
}
  0x33   :  { %27 = dma.hbm_to_vmem [thread:$0]  %s1148_s0, 128, %s25_s26, [#allocation3]  }
  0x34   :  { %s956_s27 = smov [#allocation7]   ;;  %s957_s29 = smov [#allocation10]  }
  0x35   :  { %s47_s28 = sshll.u32 %s956_s27, 4  ;;  %s75_s30 = sshll.u32 %s957_s29, 4  ;;  %s48_s28 = int_to_ptr.vmem [resolvable:$true] %s47_s28  ;;  %s76_s30 = int_to_ptr.vmem [resolvable:$true] %s75_s30 }
  0x36   :  { %s877_s13 = scalar_lea.hbm %s1151_s3, 2048 }
  0x37   :  { %p878_p10 = scmp.ne.s32.totalorder %s1151_s3, %s877_s13  ;;  %p881_p11 = scmp.lt.u32.totalorder %s877_s13, %s1151_s3 }
  0x39   :  { %p883_p12 = pnand %p881_p11, %p878_p10 }
  0x3b   :  { %886 = shalt.err (!%p883_p12)
}
  0x3c   :  { %s887_s0 = scalar_lea.vmem %s48_s28, 2048  ;;  %p892_p0 = scmp.lt.s32.totalorder %s48_s28, %s48_s28 }
  0x3d   :  { %p888_p13 = scmp.ne.s32.totalorder %s48_s28, %s887_s0  ;;  %p893_p1 = scmp.lt.s32.totalorder %s887_s0, %s887_s0 }
  0x3f   :  { %p894_p2 = por %p893_p1, %p892_p0 }
  0x41   :  { %p895_p3 = pnand %p894_p2, %p888_p13 }
  0x43   :  { %898 = shalt.err (!%p895_p3)
}
  0x44   :  { %53 = dma.hbm_to_vmem [thread:$0]  %s1151_s3, 2048, %s48_s28, [#allocation6], %s952_s19, %s952_s19, %s953_s20  }
  0x45   :  { %s899_s21 = scalar_lea.hbm %s1155_s7, 2048 }
  0x46   :  { %p900_p4 = scmp.ne.s32.totalorder %s1155_s7, %s899_s21  ;;  %p903_p5 = scmp.lt.u32.totalorder %s899_s21, %s1155_s7 }
  0x48   :  { %p905_p6 = pnand %p903_p5, %p900_p4 }
  0x4a   :  { %908 = shalt.err (!%p905_p6)
}
  0x4b   :  { %s909_s24 = scalar_lea.vmem %s76_s30, 2048  ;;  %p914_p8 = scmp.lt.s32.totalorder %s76_s30, %s76_s30 }
  0x4c   :  { %p910_p7 = scmp.ne.s32.totalorder %s76_s30, %s909_s24  ;;  %p915_p9 = scmp.lt.s32.totalorder %s909_s24, %s909_s24 }
  0x4e   :  { %p916_p10 = por %p915_p9, %p914_p8 }
  0x50   :  { %p917_p11 = pnand %p916_p10, %p910_p7 }
  0x52   :  { %920 = shalt.err (!%p917_p11)
}
  0x53   :  { %81 = dma.hbm_to_vmem [thread:$0]  %s1155_s7, 2048, %s76_s30, [#allocation9], %s952_s19, %s952_s19, %s953_s20  }
  0x54   :  { %943 = dma.done.wait [#allocation3], 128  }
  0x55   :  { %944 = vsyncadd [#allocation3], 4294967168 }
  0x56   :  { %945 = dma.done.wait [#allocation6], 4096  }
  0x57   :  { %946 = vsyncadd [#allocation6], 4294963200 }
  0x58   :  { %947 = dma.done.wait [#allocation9], 4096  }
  0x59   :  { %948 = vsyncadd [#allocation9], 4294963200  ;;  %v958_v0 = vmov 0.0|0.0   ;;  %vm959_vm0 = vmmov 0   ;;  %v960_v1 = vmov 0.0   ;;  %v100_v2 = vld [vmem:[#allocation5] sm:$0xff] }
  0x5a   :  { %704 = vmatprep.subr.bf16.mxu0 %v958_v0  ;;  %596 = vmatprep.mubr.msk.f32.mxu0 %vm959_vm0, %v960_v1  ;;  %v101_v3 = vld [vmem:[#allocation5 + $0x8] sm:$0xff]  ;;  %v102_v4 = vld [vmem:[#allocation5 + $0x10] sm:$0xff]  ;;  %v103_v6 = vld [vmem:[#allocation5 + $0x18] sm:$0xff] }
  0x5b   :  { %728 = vmatprep.subr.bf16.mxu1 %v958_v0  ;;  %631 = vmatprep.mubr.msk.f32.mxu1 %vm959_vm0, %v960_v1  ;;  %v705_v5 = vpack.c.bf16 %v101_v3, %v100_v2  ;;  %v708_v7 = vpack.c.bf16 %v103_v6, %v102_v4  ;;  %v104_v8 = vld [vmem:[#allocation5 + $0x20] sm:$0xff]  ;;  %v105_v9 = vld [vmem:[#allocation5 + $0x28] sm:$0xff]  ;;  %v196_v12 = vld [vmem:[#allocation7 + $0x10] sm:$0xff] }
  0x5c   :  { %v194_v10 = vld [vmem:[#allocation7] sm:$0xff]  ;;  %v195_v11 = vld [vmem:[#allocation7 + $0x8] sm:$0xff]  ;;  %v197_v13 = vld [vmem:[#allocation7 + $0x18] sm:$0xff]  ;;  %v711_v14 = vpack.c.bf16 %v105_v9, %v104_v8 }
  0x5d   :  { %706 = vmatpush3.bf16.msra.mxu0 %v705_v5  ;;  %v729_v15 = vpack.c.bf16 %v195_v11, %v194_v10  ;;  %v106_v16 = vld [vmem:[#allocation5 + $0x30] sm:$0xff]  ;;  %v107_v17 = vld [vmem:[#allocation5 + $0x38] sm:$0xff]  ;;  %v732_v18 = vpack.c.bf16 %v197_v13, %v196_v12  ;;  %v198_v19 = vld [vmem:[#allocation7 + $0x20] sm:$0xff] }
  0x5e   :  { %707 = vmatprep.subr.bf16.mxu0 %v958_v0  ;;  %v199_v20 = vld [vmem:[#allocation7 + $0x28] sm:$0xff]  ;;  %v714_v21 = vpack.c.bf16 %v107_v17, %v106_v16  ;;  %v108_v22 = vld [vmem:[#allocation5 + $0x40] sm:$0xff]  ;;  %v200_v25 = vld [vmem:[#allocation7 + $0x30] sm:$0xff] }
  0x5f   :  { %730 = vmatpush3.bf16.msra.mxu1 %v729_v15  ;;  %v109_v23 = vld [vmem:[#allocation5 + $0x48] sm:$0xff]  ;;  %v735_v24 = vpack.c.bf16 %v199_v20, %v198_v19  ;;  %v201_v26 = vld [vmem:[#allocation7 + $0x38] sm:$0xff]  ;;  %v110_v28 = vld [vmem:[#allocation5 + $0x50] sm:$0xff] }
  0x60   :  { %731 = vmatprep.subr.bf16.mxu1 %v958_v0  ;;  %v717_v27 = vpack.c.bf16 %v109_v23, %v108_v22  ;;  %v111_v29 = vld [vmem:[#allocation5 + $0x58] sm:$0xff]  ;;  %v738_v30 = vpack.c.bf16 %v201_v26, %v200_v25  ;;  %v202_v31 = vld [vmem:[#allocation7 + $0x40] sm:$0xff]  ;;  %v203_v32 = vld [vmem:[#allocation7 + $0x48] sm:$0xff] }
  0x61   :  { %709 = vmatpush3.bf16.msra.mxu0 %v708_v7  ;;  %v720_v33 = vpack.c.bf16 %v111_v29, %v110_v28  ;;  %v112_v34 = vld [vmem:[#allocation5 + $0x60] sm:$0xff]  ;;  %v113_v35 = vld [vmem:[#allocation5 + $0x68] sm:$0xff]  ;;  %v741_v36 = vpack.c.bf16 %v203_v32, %v202_v31  ;;  %v204_v37 = vld [vmem:[#allocation7 + $0x50] sm:$0xff] }
  0x62   :  { %710 = vmatprep.subr.bf16.mxu0 %v958_v0  ;;  %v205_v38 = vld [vmem:[#allocation7 + $0x58] sm:$0xff]  ;;  %v723_v39 = vpack.c.bf16 %v113_v35, %v112_v34  ;;  %v114_v40 = vld [vmem:[#allocation5 + $0x70] sm:$0xff]  ;;  %v206_v43 = vld [vmem:[#allocation7 + $0x60] sm:$0xff] }
  0x63   :  { %733 = vmatpush3.bf16.msra.mxu1 %v732_v18  ;;  %v115_v41 = vld [vmem:[#allocation5 + $0x78] sm:$0xff]  ;;  %v744_v42 = vpack.c.bf16 %v205_v38, %v204_v37  ;;  %v207_v44 = vld [vmem:[#allocation7 + $0x68] sm:$0xff]  ;;  %v208_v48 = vld [vmem:[#allocation7 + $0x70] sm:$0xff] }
  0x64   :  { %734 = vmatprep.subr.bf16.mxu1 %v958_v0  ;;  %v726_v45 = vpack.c.bf16 %v115_v41, %v114_v40  ;;  %v747_v46 = vpack.c.bf16 %v207_v44, %v206_v43  ;;  %v99_v47 = vld [vmem:[#allocation2] sm:$0xff]  ;;  %v287_v51 = vld [vmem:[#allocation8] sm:$0xff]  ;;  %v288_v52 = vld [vmem:[#allocation8 + $0x8] sm:$0xff] }
  0x65   :  { %712 = vmatpush3.bf16.msra.mxu0 %v711_v14  ;;  %v209_v49 = vld [vmem:[#allocation7 + $0x78] sm:$0xff]  ;;  %v289_v53 = vld [vmem:[#allocation8 + $0x10] sm:$0xff]  ;;  %v753_v54 = vpack.c.bf16 %v288_v52, %v287_v51  ;;  %v291_v57 = vld [vmem:[#allocation8 + $0x20] sm:$0xff] }
  0x66   :  { %713 = vmatprep.subr.bf16.mxu0 %v958_v0  ;;  %v750_v50 = vpack.c.bf16 %v209_v49, %v208_v48  ;;  %v290_v55 = vld [vmem:[#allocation8 + $0x18] sm:$0xff]  ;;  %v292_v58 = vld [vmem:[#allocation8 + $0x28] sm:$0xff]  ;;  %v293_v60 = vld [vmem:[#allocation8 + $0x30] sm:$0xff] }
  0x67   :  { %736 = vmatpush3.bf16.msra.mxu1 %v735_v24  ;;  %v756_v56 = vpack.c.bf16 %v290_v55, %v289_v53  ;;  %v759_v59 = vpack.c.bf16 %v292_v58, %v291_v57  ;;  %v294_v61 = vld [vmem:[#allocation8 + $0x38] sm:$0xff]  ;;  %v295_v63 = vld [vmem:[#allocation8 + $0x40] sm:$0xff]  ;;  %v296_v2 = vld [vmem:[#allocation8 + $0x48] sm:$0xff] }
  0x68   :  { %737 = vmatprep.subr.bf16.mxu1 %v958_v0  ;;  %v762_v62 = vpack.c.bf16 %v294_v61, %v293_v60  ;;  %v765_v3 = vpack.c.bf16 %v296_v2, %v295_v63  ;;  %v297_v4 = vld [vmem:[#allocation8 + $0x50] sm:$0xff]  ;;  %v298_v5 = vld [vmem:[#allocation8 + $0x58] sm:$0xff]  ;;  %v299_v7 = vld [vmem:[#allocation8 + $0x60] sm:$0xff] }
  0x69   :  { %715 = vmatpush3.bf16.msra.mxu0 %v714_v21  ;;  %v768_v6 = vpack.c.bf16 %v298_v5, %v297_v4  ;;  %v300_v8 = vld [vmem:[#allocation8 + $0x68] sm:$0xff]  ;;  %v492_v10 = vld [vmem:[%s1150_s2] ss:$0 sm:$0xff]  ;;  %v301_v15 = vld [vmem:[#allocation8 + $0x70] sm:$0xff] }
  0x6a   :  { %716 = vmatprep.subr.bf16.mxu0 %v958_v0  ;;  %v771_v9 = vpack.c.bf16 %v300_v8, %v299_v7  ;;  %v302_v16 = vld [vmem:[#allocation8 + $0x78] sm:$0xff]  ;;  %v381_v18 = vld [vmem:[#allocation10] sm:$0xff]  ;;  %v382_v19 = vld [vmem:[#allocation10 + $0x8] sm:$0xff] }
  0x6b   :  { %739 = vmatpush3.bf16.msra.mxu1 %v738_v30  ;;  %v774_v17 = vpack.c.bf16 %v302_v16, %v301_v15  ;;  %v383_v20 = vld [vmem:[#allocation10 + $0x10] sm:$0xff]  ;;  %v777_v21 = vpack.c.bf16 %v382_v19, %v381_v18  ;;  %v384_v22 = vld [vmem:[#allocation10 + $0x18] sm:$0xff]  ;;  %v385_v24 = vld [vmem:[#allocation10 + $0x20] sm:$0xff] }
  0x6c   :  { %740 = vmatprep.subr.bf16.mxu1 %v958_v0  ;;  %v780_v23 = vpack.c.bf16 %v384_v22, %v383_v20  ;;  %v386_v25 = vld [vmem:[#allocation10 + $0x28] sm:$0xff]  ;;  %v389_v29 = vld [vmem:[#allocation10 + $0x40] sm:$0xff]  ;;  %v391_v32 = vld [vmem:[#allocation10 + $0x50] sm:$0xff] }
  0x6d   :  { %718 = vmatpush3.bf16.msra.mxu0 %v717_v27  ;;  %v783_v26 = vpack.c.bf16 %v386_v25, %v385_v24  ;;  %v388_v27 = vld [vmem:[#allocation10 + $0x38] sm:$0xff]  ;;  %v390_v30 = vld [vmem:[#allocation10 + $0x48] sm:$0xff]  ;;  %v393_v35 = vld [vmem:[#allocation10 + $0x60] sm:$0xff] }
  0x6e   :  { %719 = vmatprep.subr.bf16.mxu0 %v958_v0  ;;  %v789_v31 = vpack.c.bf16 %v390_v30, %v389_v29  ;;  %v493_v38 = vld [vmem:[%s1152_s4] ss:$0 sm:$0xff]  ;;  %s961_s4 = smov [#allocation11]  }
  0x6f   :  { %742 = vmatpush3.bf16.msra.mxu1 %v741_v36  ;;  %v394_v36 = vld [vmem:[#allocation10 + $0x68] sm:$0xff]  ;;  %v396_v43 = vld [vmem:[#allocation10 + $0x78] sm:$0xff]  ;;  %s481_s12 = sshll.u32 %s961_s4, 4  ;;  %s482_s12 = int_to_ptr.vmem [resolvable:$true] %s481_s12 }
  0x70   :  { %743 = vmatprep.subr.bf16.mxu1 %v958_v0  ;;  %v795_v37 = vpack.c.bf16 %v394_v36, %v393_v35  ;;  %v495_v49 = vld [vmem:[%s1156_s8] ss:$0 sm:$0xff]  ;;  %s921_s13 = scalar_lea.vmem %s482_s12, 128  ;;  %p926_p13 = scmp.lt.s32.totalorder %s482_s12, %s482_s12 }
  0x71   :  { %721 = vmatpush3.bf16.msra.mxu0 %v720_v33  ;;  %v392_v33 = vld [vmem:[#allocation10 + $0x58] sm:$0xff]  ;;  %p922_p12 = scmp.ne.s32.totalorder %s482_s12, %s921_s13  ;;  %p927_p0 = scmp.lt.s32.totalorder %s921_s13, %s921_s13 }
  0x72   :  { %722 = vmatprep.subr.bf16.mxu0 %v958_v0  ;;  %v792_v34 = vpack.c.bf16 %v392_v33, %v391_v32 }
  0x73   :  { %745 = vmatpush3.bf16.msra.mxu1 %v744_v42  ;;  %v395_v42 = vld [vmem:[#allocation10 + $0x70] sm:$0xff]  ;;  %p928_p1 = por %p927_p0, %p926_p13 }
  0x74   :  { %746 = vmatprep.subr.bf16.mxu1 %v958_v0  ;;  %v798_v44 = vpack.c.bf16 %v396_v43, %v395_v42 }
  0x75   :  { %724 = vmatpush3.bf16.msra.mxu0 %v723_v39  ;;  %p929_p2 = pnand %p928_p1, %p922_p12 }
  0x76   :  { %725 = vmatprep.subr.bf16.mxu0 %v958_v0 }
  0x77   :  { %748 = vmatpush3.bf16.msra.mxu1 %v747_v46 }
  0x78   :  { %749 = vmatprep.subr.bf16.mxu1 %v958_v0 }
  0x79   :  { %727 = vmatpush3.bf16.msra.mxu0 %v726_v45  ;;  %v494_v45 = vld [vmem:[%s1154_s6] ss:$0 sm:$0xff] }
  0x7a   :  { %752 = vmatprep.subr.bf16.mxu0 %v958_v0 }
  0x7b   :  { %751 = vmatpush3.bf16.msra.mxu1 %v750_v50 }
  0x7c   :  { %597 = vmatmul.mubr.f32.vlgmr.msra.gmra.mrb[0].mxu0 %v99_v47  ;;  %776 = vmatprep.subr.bf16.mxu1 %v958_v0 }
  0x7d   :  { %666 = vmatprep.mubr.msk.f32.mxu0 %vm959_vm0, %v960_v1  ;;  %754 = vmatpush3.bf16.msra.mxu0 %v753_v54 }
  0x7e   :  { %755 = vmatprep.subr.bf16.mxu0 %v958_v0 }
  0x81   :  { %757 = vmatpush3.bf16.msra.mxu0 %v756_v56 }
  0x82   :  { %758 = vmatprep.subr.bf16.mxu0 %v958_v0 }
  0x85   :  { %760 = vmatpush3.bf16.msra.mxu0 %v759_v59 }
  0x86   :  { %761 = vmatprep.subr.bf16.mxu0 %v958_v0 }
  0x89   :  { %763 = vmatpush3.bf16.msra.mxu0 %v762_v62 }
  0x8a   :  { %764 = vmatprep.subr.bf16.mxu0 %v958_v0 }
  0x8d   :  { %766 = vmatpush3.bf16.msra.mxu0 %v765_v3 }
  0x8e   :  { %767 = vmatprep.subr.bf16.mxu0 %v958_v0 }
  0x91   :  { %769 = vmatpush3.bf16.msra.mxu0 %v768_v6 }
  0x92   :  { %770 = vmatprep.subr.bf16.mxu0 %v958_v0 }
  0x95   :  { %772 = vmatpush3.bf16.msra.mxu0 %v771_v9 }
  0x96   :  { %773 = vmatprep.subr.bf16.mxu0 %v958_v0 }
  0x99   :  { %775 = vmatpush3.bf16.msra.mxu0 %v774_v17 }
 0x14f   :  { %v189_v11 = vpop.f32.mrb[0].mxu0 }
 0x150   :  { %v190_v12 = vadd.f32 %v492_v10, %v189_v11  ;;  %v598_v13 = vpop.f32.mrb[1].mxu0 }
 0x152   :  { %v193_v14 = vmax.f32 %v190_v12, 0.0 }
 0x154   :  { %632 = vmatmul.mubr.f32.vlgmr.msra.gmra.mrb[0].mxu1 %v193_v14 }
 0x155   :  { %701 = vmatprep.mubr.msk.f32.mxu1 %vm959_vm0, %v960_v1  ;;  %778 = vmatpush3.bf16.msra.mxu1 %v777_v21  ;;  %v387_v1 = vld [vmem:[#allocation10 + $0x30] sm:$0xff] }
 0x156   :  { %779 = vmatprep.subr.bf16.mxu1 %v958_v0  ;;  %v786_v28 = vpack.c.bf16 %v388_v27, %v387_v1 }
 0x159   :  { %781 = vmatpush3.bf16.msra.mxu1 %v780_v23 }
 0x15a   :  { %782 = vmatprep.subr.bf16.mxu1 %v958_v0 }
 0x15d   :  { %784 = vmatpush3.bf16.msra.mxu1 %v783_v26 }
 0x15e   :  { %785 = vmatprep.subr.bf16.mxu1 %v958_v0 }
 0x161   :  { %787 = vmatpush3.bf16.msra.mxu1 %v786_v28 }
 0x162   :  { %788 = vmatprep.subr.bf16.mxu1 %v958_v0 }
 0x165   :  { %790 = vmatpush3.bf16.msra.mxu1 %v789_v31 }
 0x166   :  { %791 = vmatprep.subr.bf16.mxu1 %v958_v0 }
 0x169   :  { %793 = vmatpush3.bf16.msra.mxu1 %v792_v34 }
 0x16a   :  { %794 = vmatprep.subr.bf16.mxu1 %v958_v0 }
 0x16d   :  { %796 = vmatpush3.bf16.msra.mxu1 %v795_v37 }
 0x16e   :  { %797 = vmatprep.subr.bf16.mxu1 %v958_v0 }
 0x171   :  { %799 = vmatpush3.bf16.msra.mxu1 %v798_v44 }
 0x227   :  { %v283_v39 = vpop.f32.mrb[0].mxu1 }
 0x228   :  { %v284_v40 = vadd.f32 %v493_v38, %v283_v39  ;;  %v633_v41 = vpop.f32.mrb[1].mxu1 }
 0x22a   :  { %667 = vmatmul.mubr.f32.vlgmr.msra.gmra.mrb[2].mxu0 %v284_v40 }
 0x2fd   :  { %v376_v46 = vpop.f32.mrb[2].mxu0 }
 0x2fe   :  { %v377_v47 = vadd.f32 %v494_v45, %v376_v46  ;;  %v668_v48 = vpop.f32.mrb[3].mxu0 }
 0x300   :  { %v380_v0 = vmax.f32 %v377_v47, 0.0 }
 0x302   :  { %702 = vmatmul.mubr.f32.vlgmr.msra.gmra.mrb[2].mxu1 %v380_v0 }
 0x3d5   :  { %v470_v50 = vpop.f32.mrb[2].mxu1 }
 0x3d6   :  { %v471_v51 = vadd.f32 %v495_v49, %v470_v50  ;;  %v703_v52 = vpop.f32.mrb[3].mxu1 }
 0x3d8   :  { %474 = vst [vmem:[#allocation11] sm:$0xff] %v471_v51 }
 0x3d9   :  { %932 = shalt.err (!%p929_p2)
}
 0x3da   :  { %s933_s10 = scalar_lea.hbm %s1157_s9, 128 }
 0x3db   :  { %p934_p3 = scmp.ne.s32.totalorder %s1157_s9, %s933_s10  ;;  %p937_p4 = scmp.lt.u32.totalorder %s933_s10, %s1157_s9 }
 0x3dd   :  { %p939_p5 = pnand %p937_p4, %p934_p3 }
 0x3df   :  { %942 = shalt.err (!%p939_p5)
}
 0x3e0   :  { %484 = dma.vmem_to_hbm [thread:$0]  %s482_s12, 128, %s1157_s9, [#allocation4]  }
 0x3e1   :  { %949 = dma.done.wait [#allocation4], 128  }
 0x3e2   :  { %950 = vsyncadd [#allocation4], 4294967168 }
 0x3e3   :  { %488 = vsyncpa [#allocation3], 1 }
 0x3e4   :  { %489 = vsyncpa [#allocation6], 1 }
 0x3e5   :  { %490 = vsyncpa [#allocation9], 1 }
 0x3e6   :  { %491 = vsyncpa [#allocation4], 1 }

// kernel: tpu_custom_call.1
= control target key start
LH: loop header
LB: loop body
LE: loop exit
PB: predicated region body
PF: predicated region fallthrough
CT: control target
= control target key end

     0   :  { %14 = vsyncpa [#allocation3], 0  ;;  %s1148_s0 = inlined_call_operand.hbm [shape: f32[8,128], index: 0, kind: input, shape index: {}]   ;;  %s1149_s1 = inlined_call_operand.hbm [shape: f32[128,128], index: 1, kind: input, shape index: {}]   ;;  %s1150_s2 = inlined_call_operand.vmem [shape: f32[1,128], index: 2, kind: input, shape index: {}]   ;;  %s1151_s3 = inlined_call_operand.hbm [shape: f32[128,128], index: 3, kind: input, shape index: {}]   ;;  %s1152_s4 = inlined_call_operand.vmem [shape: f32[1,128], index: 4, kind: input, shape index: {}]   ;;  %s1153_s5 = inlined_call_operand.hbm [shape: f32[128,128], index: 5, kind: input, shape index: {}]   ;;  %s1154_s6 = inlined_call_operand.vmem [shape: f32[1,128], index: 6, kind: input, shape index: {}]   ;;  %s1155_s7 = inlined_call_operand.hbm [shape: f32[128,128], index: 7, kind: input, shape index: {}]   ;;  %s1156_s8 = inlined_call_operand.vmem [shape: f32[1,128], index: 8, kind: input, shape index: {}]   ;;  %s1157_s9 = inlined_call_operand.hbm [shape: f32[8,128], index: 9, kind: output, shape index: {}]  }
   0x1   :  { %15 = vsyncpa [#allocation6], 0 }
   0x2   :  { %16 = vsyncpa [#allocation9], 0 }
   0x3   :  { %17 = vsyncpa [#allocation4], 0  ;;  %s951_s30 = smov [#allocation5]   ;;  %s811_s13 = scalar_lea.hbm %s1149_s1, 2048 }
   0x4   :  { %s33_s10 = sshll.u32 %s951_s30, 4  ;;  %p812_p0 = scmp.ne.s32.totalorder %s1149_s1, %s811_s13  ;;  %s34_s10 = int_to_ptr.vmem [resolvable:$true] %s33_s10 }
   0x5   :  { %p815_p1 = scmp.lt.u32.totalorder %s811_s13, %s1149_s1 }
   0x7   :  { %p817_p2 = pnand %p815_p1, %p812_p0 }
   0x9   :  { %820 = shalt.err (!%p817_p2)
}
   0xa   :  { %s821_s18 = scalar_lea.vmem %s34_s10, 2048  ;;  %p826_p4 = scmp.lt.s32.totalorder %s34_s10, %s34_s10 }
   0xb   :  { %p822_p3 = scmp.ne.s32.totalorder %s34_s10, %s821_s18  ;;  %p827_p5 = scmp.lt.s32.totalorder %s821_s18, %s821_s18 }
   0xd   :  { %p828_p6 = por %p827_p5, %p826_p4 }
   0xf   :  { %p829_p7 = pnand %p828_p6, %p822_p3 }
  0x11   :  { %832 = shalt.err (!%p829_p7)
}
  0x12   :  { %s952_s19 = smov 128   ;;  %s953_s20 = smov 8  }
  0x13   :  { %39 = dma.hbm_to_vmem [thread:$0]  %s1149_s1, 2048, %s34_s10, [#allocation6], %s952_s19, %s952_s19, %s953_s20  }
  0x14   :  { %s954_s23 = smov [#allocation8]   ;;  %s955_s25 = smov [#allocation2]  }
  0x15   :  { %s61_s24 = sshll.u32 %s954_s23, 4  ;;  %s24_s26 = sshll.u32 %s955_s25, 4  ;;  %s62_s24 = int_to_ptr.vmem [resolvable:$true] %s61_s24  ;;  %s25_s26 = int_to_ptr.vmem [resolvable:$true] %s24_s26 }
  0x16   :  { %s833_s29 = scalar_lea.hbm %s1153_s5, 2048 }
  0x17   :  { %p834_p8 = scmp.ne.s32.totalorder %s1153_s5, %s833_s29  ;;  %p837_p9 = scmp.lt.u32.totalorder %s833_s29, %s1153_s5 }
  0x19   :  { %p839_p10 = pnand %p837_p9, %p834_p8 }
  0x1b   :  { %842 = shalt.err (!%p839_p10)
}
  0x1c   :  { %s843_s1 = scalar_lea.vmem %s62_s24, 2048  ;;  %p848_p12 = scmp.lt.s32.totalorder %s62_s24, %s62_s24 }
  0x1d   :  { %p844_p11 = scmp.ne.s32.totalorder %s62_s24, %s843_s1  ;;  %p849_p13 = scmp.lt.s32.totalorder %s843_s1, %s843_s1 }
  0x1f   :  { %p850_p0 = por %p849_p13, %p848_p12 }
  0x21   :  { %p851_p1 = pnand %p850_p0, %p844_p11 }
  0x23   :  { %854 = shalt.err (!%p851_p1)
}
  0x24   :  { %67 = dma.hbm_to_vmem [thread:$0]  %s1153_s5, 2048, %s62_s24, [#allocation9], %s952_s19, %s952_s19, %s953_s20  }
  0x25   :  { %s855_s17 = scalar_lea.hbm %s1148_s0, 128 }
  0x26   :  { %p856_p2 = scmp.ne.s32.totalorder %s1148_s0, %s855_s17  ;;  %p859_p3 = scmp.lt.u32.totalorder %s855_s17, %s1148_s0 }
  0x28   :  { %p861_p4 = pnand %p859_p3, %p856_p2 }
  0x2a   :  { %864 = shalt.err (!%p861_p4)
}
  0x2b   :  { %s865_s25 = scalar_lea.vmem %s25_s26, 128  ;;  %p870_p6 = scmp.lt.s32.totalorder %s25_s26, %s25_s26 }
  0x2c   :  { %p866_p5 = scmp.ne.s32.totalorder %s25_s26, %s865_s25  ;;  %p871_p7 = scmp.lt.s32.totalorder %s865_s25, %s865_s25 }
  0x2e   :  { %p872_p8 = por %p871_p7, %p870_p6 }
  0x30   :  { %p873_p9 = pnand %p872_p8, %p866_p5 }
  0x32   :  { %876 = shalt.err (!%p873_p9)
}
  0x33   :  { %27 = dma.hbm_to_vmem [thread:$0]  %s1148_s0, 128, %s25_s26, [#allocation3]  }
  0x34   :  { %s956_s27 = smov [#allocation7]   ;;  %s957_s29 = smov [#allocation10]  }
  0x35   :  { %s47_s28 = sshll.u32 %s956_s27, 4  ;;  %s75_s30 = sshll.u32 %s957_s29, 4  ;;  %s48_s28 = int_to_ptr.vmem [resolvable:$true] %s47_s28  ;;  %s76_s30 = int_to_ptr.vmem [resolvable:$true] %s75_s30 }
  0x36   :  { %s877_s13 = scalar_lea.hbm %s1151_s3, 2048 }
  0x37   :  { %p878_p10 = scmp.ne.s32.totalorder %s1151_s3, %s877_s13  ;;  %p881_p11 = scmp.lt.u32.totalorder %s877_s13, %s1151_s3 }
  0x39   :  { %p883_p12 = pnand %p881_p11, %p878_p10 }
  0x3b   :  { %886 = shalt.err (!%p883_p12)
}
  0x3c   :  { %s887_s0 = scalar_lea.vmem %s48_s28, 2048  ;;  %p892_p0 = scmp.lt.s32.totalorder %s48_s28, %s48_s28 }
  0x3d   :  { %p888_p13 = scmp.ne.s32.totalorder %s48_s28, %s887_s0  ;;  %p893_p1 = scmp.lt.s32.totalorder %s887_s0, %s887_s0 }
  0x3f   :  { %p894_p2 = por %p893_p1, %p892_p0 }
  0x41   :  { %p895_p3 = pnand %p894_p2, %p888_p13 }
  0x43   :  { %898 = shalt.err (!%p895_p3)
}
  0x44   :  { %53 = dma.hbm_to_vmem [thread:$0]  %s1151_s3, 2048, %s48_s28, [#allocation6], %s952_s19, %s952_s19, %s953_s20  }
  0x45   :  { %s899_s21 = scalar_lea.hbm %s1155_s7, 2048 }
  0x46   :  { %p900_p4 = scmp.ne.s32.totalorder %s1155_s7, %s899_s21  ;;  %p903_p5 = scmp.lt.u32.totalorder %s899_s21, %s1155_s7 }
  0x48   :  { %p905_p6 = pnand %p903_p5, %p900_p4 }
  0x4a   :  { %908 = shalt.err (!%p905_p6)
}
  0x4b   :  { %s909_s24 = scalar_lea.vmem %s76_s30, 2048  ;;  %p914_p8 = scmp.lt.s32.totalorder %s76_s30, %s76_s30 }
  0x4c   :  { %p910_p7 = scmp.ne.s32.totalorder %s76_s30, %s909_s24  ;;  %p915_p9 = scmp.lt.s32.totalorder %s909_s24, %s909_s24 }
  0x4e   :  { %p916_p10 = por %p915_p9, %p914_p8 }
  0x50   :  { %p917_p11 = pnand %p916_p10, %p910_p7 }
  0x52   :  { %920 = shalt.err (!%p917_p11)
}
  0x53   :  { %81 = dma.hbm_to_vmem [thread:$0]  %s1155_s7, 2048, %s76_s30, [#allocation9], %s952_s19, %s952_s19, %s953_s20  }
  0x54   :  { %943 = dma.done.wait [#allocation3], 128  }
  0x55   :  { %944 = vsyncadd [#allocation3], 4294967168 }
  0x56   :  { %945 = dma.done.wait [#allocation6], 4096  }
  0x57   :  { %946 = vsyncadd [#allocation6], 4294963200 }
  0x58   :  { %947 = dma.done.wait [#allocation9], 4096  }
  0x59   :  { %948 = vsyncadd [#allocation9], 4294963200  ;;  %v958_v0 = vmov 0.0|0.0   ;;  %vm959_vm0 = vmmov 0   ;;  %v960_v1 = vmov 0.0   ;;  %v100_v2 = vld [vmem:[#allocation5] sm:$0xff] }
  0x5a   :  { %704 = vmatprep.subr.bf16.mxu0 %v958_v0  ;;  %596 = vmatprep.mubr.msk.f32.mxu0 %vm959_vm0, %v960_v1  ;;  %v101_v3 = vld [vmem:[#allocation5 + $0x8] sm:$0xff]  ;;  %v102_v4 = vld [vmem:[#allocation5 + $0x10] sm:$0xff]  ;;  %v103_v6 = vld [vmem:[#allocation5 + $0x18] sm:$0xff] }
  0x5b   :  { %728 = vmatprep.subr.bf16.mxu1 %v958_v0  ;;  %631 = vmatprep.mubr.msk.f32.mxu1 %vm959_vm0, %v960_v1  ;;  %v705_v5 = vpack.c.bf16 %v101_v3, %v100_v2  ;;  %v708_v7 = vpack.c.bf16 %v103_v6, %v102_v4  ;;  %v104_v8 = vld [vmem:[#allocation5 + $0x20] sm:$0xff]  ;;  %v105_v9 = vld [vmem:[#allocation5 + $0x28] sm:$0xff]  ;;  %v196_v12 = vld [vmem:[#allocation7 + $0x10] sm:$0xff] }
  0x5c   :  { %v194_v10 = vld [vmem:[#allocation7] sm:$0xff]  ;;  %v195_v11 = vld [vmem:[#allocation7 + $0x8] sm:$0xff]  ;;  %v197_v13 = vld [vmem:[#allocation7 + $0x18] sm:$0xff]  ;;  %v711_v14 = vpack.c.bf16 %v105_v9, %v104_v8 }
  0x5d   :  { %706 = vmatpush3.bf16.msra.mxu0 %v705_v5  ;;  %v729_v15 = vpack.c.bf16 %v195_v11, %v194_v10  ;;  %v106_v16 = vld [vmem:[#allocation5 + $0x30] sm:$0xff]  ;;  %v107_v17 = vld [vmem:[#allocation5 + $0x38] sm:$0xff]  ;;  %v732_v18 = vpack.c.bf16 %v197_v13, %v196_v12  ;;  %v198_v19 = vld [vmem:[#allocation7 + $0x20] sm:$0xff] }
  0x5e   :  { %707 = vmatprep.subr.bf16.mxu0 %v958_v0  ;;  %v199_v20 = vld [vmem:[#allocation7 + $0x28] sm:$0xff]  ;;  %v714_v21 = vpack.c.bf16 %v107_v17, %v106_v16  ;;  %v108_v22 = vld [vmem:[#allocation5 + $0x40] sm:$0xff]  ;;  %v200_v25 = vld [vmem:[#allocation7 + $0x30] sm:$0xff] }
  0x5f   :  { %730 = vmatpush3.bf16.msra.mxu1 %v729_v15  ;;  %v109_v23 = vld [vmem:[#allocation5 + $0x48] sm:$0xff]  ;;  %v735_v24 = vpack.c.bf16 %v199_v20, %v198_v19  ;;  %v201_v26 = vld [vmem:[#allocation7 + $0x38] sm:$0xff]  ;;  %v110_v28 = vld [vmem:[#allocation5 + $0x50] sm:$0xff] }
  0x60   :  { %731 = vmatprep.subr.bf16.mxu1 %v958_v0  ;;  %v717_v27 = vpack.c.bf16 %v109_v23, %v108_v22  ;;  %v111_v29 = vld [vmem:[#allocation5 + $0x58] sm:$0xff]  ;;  %v738_v30 = vpack.c.bf16 %v201_v26, %v200_v25  ;;  %v202_v31 = vld [vmem:[#allocation7 + $0x40] sm:$0xff]  ;;  %v203_v32 = vld [vmem:[#allocation7 + $0x48] sm:$0xff] }
  0x61   :  { %709 = vmatpush3.bf16.msra.mxu0 %v708_v7  ;;  %v720_v33 = vpack.c.bf16 %v111_v29, %v110_v28  ;;  %v112_v34 = vld [vmem:[#allocation5 + $0x60] sm:$0xff]  ;;  %v113_v35 = vld [vmem:[#allocation5 + $0x68] sm:$0xff]  ;;  %v741_v36 = vpack.c.bf16 %v203_v32, %v202_v31  ;;  %v204_v37 = vld [vmem:[#allocation7 + $0x50] sm:$0xff] }
  0x62   :  { %710 = vmatprep.subr.bf16.mxu0 %v958_v0  ;;  %v205_v38 = vld [vmem:[#allocation7 + $0x58] sm:$0xff]  ;;  %v723_v39 = vpack.c.bf16 %v113_v35, %v112_v34  ;;  %v114_v40 = vld [vmem:[#allocation5 + $0x70] sm:$0xff]  ;;  %v206_v43 = vld [vmem:[#allocation7 + $0x60] sm:$0xff] }
  0x63   :  { %733 = vmatpush3.bf16.msra.mxu1 %v732_v18  ;;  %v115_v41 = vld [vmem:[#allocation5 + $0x78] sm:$0xff]  ;;  %v744_v42 = vpack.c.bf16 %v205_v38, %v204_v37  ;;  %v207_v44 = vld [vmem:[#allocation7 + $0x68] sm:$0xff]  ;;  %v208_v48 = vld [vmem:[#allocation7 + $0x70] sm:$0xff] }
  0x64   :  { %734 = vmatprep.subr.bf16.mxu1 %v958_v0  ;;  %v726_v45 = vpack.c.bf16 %v115_v41, %v114_v40  ;;  %v747_v46 = vpack.c.bf16 %v207_v44, %v206_v43  ;;  %v99_v47 = vld [vmem:[#allocation2] sm:$0xff]  ;;  %v287_v51 = vld [vmem:[#allocation8] sm:$0xff]  ;;  %v288_v52 = vld [vmem:[#allocation8 + $0x8] sm:$0xff] }
  0x65   :  { %712 = vmatpush3.bf16.msra.mxu0 %v711_v14  ;;  %v209_v49 = vld [vmem:[#allocation7 + $0x78] sm:$0xff]  ;;  %v289_v53 = vld [vmem:[#allocation8 + $0x10] sm:$0xff]  ;;  %v753_v54 = vpack.c.bf16 %v288_v52, %v287_v51  ;;  %v291_v57 = vld [vmem:[#allocation8 + $0x20] sm:$0xff] }
  0x66   :  { %713 = vmatprep.subr.bf16.mxu0 %v958_v0  ;;  %v750_v50 = vpack.c.bf16 %v209_v49, %v208_v48  ;;  %v290_v55 = vld [vmem:[#allocation8 + $0x18] sm:$0xff]  ;;  %v292_v58 = vld [vmem:[#allocation8 + $0x28] sm:$0xff]  ;;  %v293_v60 = vld [vmem:[#allocation8 + $0x30] sm:$0xff] }
  0x67   :  { %736 = vmatpush3.bf16.msra.mxu1 %v735_v24  ;;  %v756_v56 = vpack.c.bf16 %v290_v55, %v289_v53  ;;  %v759_v59 = vpack.c.bf16 %v292_v58, %v291_v57  ;;  %v294_v61 = vld [vmem:[#allocation8 + $0x38] sm:$0xff]  ;;  %v295_v63 = vld [vmem:[#allocation8 + $0x40] sm:$0xff]  ;;  %v296_v2 = vld [vmem:[#allocation8 + $0x48] sm:$0xff] }
  0x68   :  { %737 = vmatprep.subr.bf16.mxu1 %v958_v0  ;;  %v762_v62 = vpack.c.bf16 %v294_v61, %v293_v60  ;;  %v765_v3 = vpack.c.bf16 %v296_v2, %v295_v63  ;;  %v297_v4 = vld [vmem:[#allocation8 + $0x50] sm:$0xff]  ;;  %v298_v5 = vld [vmem:[#allocation8 + $0x58] sm:$0xff]  ;;  %v299_v7 = vld [vmem:[#allocation8 + $0x60] sm:$0xff] }
  0x69   :  { %715 = vmatpush3.bf16.msra.mxu0 %v714_v21  ;;  %v768_v6 = vpack.c.bf16 %v298_v5, %v297_v4  ;;  %v300_v8 = vld [vmem:[#allocation8 + $0x68] sm:$0xff]  ;;  %v492_v10 = vld [vmem:[%s1150_s2] ss:$0 sm:$0xff]  ;;  %v301_v15 = vld [vmem:[#allocation8 + $0x70] sm:$0xff] }
  0x6a   :  { %716 = vmatprep.subr.bf16.mxu0 %v958_v0  ;;  %v771_v9 = vpack.c.bf16 %v300_v8, %v299_v7  ;;  %v302_v16 = vld [vmem:[#allocation8 + $0x78] sm:$0xff]  ;;  %v381_v18 = vld [vmem:[#allocation10] sm:$0xff]  ;;  %v382_v19 = vld [vmem:[#allocation10 + $0x8] sm:$0xff] }
  0x6b   :  { %739 = vmatpush3.bf16.msra.mxu1 %v738_v30  ;;  %v774_v17 = vpack.c.bf16 %v302_v16, %v301_v15  ;;  %v383_v20 = vld [vmem:[#allocation10 + $0x10] sm:$0xff]  ;;  %v777_v21 = vpack.c.bf16 %v382_v19, %v381_v18  ;;  %v384_v22 = vld [vmem:[#allocation10 + $0x18] sm:$0xff]  ;;  %v385_v24 = vld [vmem:[#allocation10 + $0x20] sm:$0xff] }
  0x6c   :  { %740 = vmatprep.subr.bf16.mxu1 %v958_v0  ;;  %v780_v23 = vpack.c.bf16 %v384_v22, %v383_v20  ;;  %v386_v25 = vld [vmem:[#allocation10 + $0x28] sm:$0xff]  ;;  %v389_v29 = vld [vmem:[#allocation10 + $0x40] sm:$0xff]  ;;  %v391_v32 = vld [vmem:[#allocation10 + $0x50] sm:$0xff] }
  0x6d   :  { %718 = vmatpush3.bf16.msra.mxu0 %v717_v27  ;;  %v783_v26 = vpack.c.bf16 %v386_v25, %v385_v24  ;;  %v388_v27 = vld [vmem:[#allocation10 + $0x38] sm:$0xff]  ;;  %v390_v30 = vld [vmem:[#allocation10 + $0x48] sm:$0xff]  ;;  %v393_v35 = vld [vmem:[#allocation10 + $0x60] sm:$0xff] }
  0x6e   :  { %719 = vmatprep.subr.bf16.mxu0 %v958_v0  ;;  %v789_v31 = vpack.c.bf16 %v390_v30, %v389_v29  ;;  %v493_v38 = vld [vmem:[%s1152_s4] ss:$0 sm:$0xff]  ;;  %s961_s4 = smov [#allocation11]  }
  0x6f   :  { %742 = vmatpush3.bf16.msra.mxu1 %v741_v36  ;;  %v394_v36 = vld [vmem:[#allocation10 + $0x68] sm:$0xff]  ;;  %v396_v43 = vld [vmem:[#allocation10 + $0x78] sm:$0xff]  ;;  %s481_s12 = sshll.u32 %s961_s4, 4  ;;  %s482_s12 = int_to_ptr.vmem [resolvable:$true] %s481_s12 }
  0x70   :  { %743 = vmatprep.subr.bf16.mxu1 %v958_v0  ;;  %v795_v37 = vpack.c.bf16 %v394_v36, %v393_v35  ;;  %v495_v49 = vld [vmem:[%s1156_s8] ss:$0 sm:$0xff]  ;;  %s921_s13 = scalar_lea.vmem %s482_s12, 128  ;;  %p926_p13 = scmp.lt.s32.totalorder %s482_s12, %s482_s12 }
  0x71   :  { %721 = vmatpush3.bf16.msra.mxu0 %v720_v33  ;;  %v392_v33 = vld [vmem:[#allocation10 + $0x58] sm:$0xff]  ;;  %p922_p12 = scmp.ne.s32.totalorder %s482_s12, %s921_s13  ;;  %p927_p0 = scmp.lt.s32.totalorder %s921_s13, %s921_s13 }
  0x72   :  { %722 = vmatprep.subr.bf16.mxu0 %v958_v0  ;;  %v792_v34 = vpack.c.bf16 %v392_v33, %v391_v32 }
  0x73   :  { %745 = vmatpush3.bf16.msra.mxu1 %v744_v42  ;;  %v395_v42 = vld [vmem:[#allocation10 + $0x70] sm:$0xff]  ;;  %p928_p1 = por %p927_p0, %p926_p13 }
  0x74   :  { %746 = vmatprep.subr.bf16.mxu1 %v958_v0  ;;  %v798_v44 = vpack.c.bf16 %v396_v43, %v395_v42 }
  0x75   :  { %724 = vmatpush3.bf16.msra.mxu0 %v723_v39  ;;  %p929_p2 = pnand %p928_p1, %p922_p12 }
  0x76   :  { %725 = vmatprep.subr.bf16.mxu0 %v958_v0 }
  0x77   :  { %748 = vmatpush3.bf16.msra.mxu1 %v747_v46 }
  0x78   :  { %749 = vmatprep.subr.bf16.mxu1 %v958_v0 }
  0x79   :  { %727 = vmatpush3.bf16.msra.mxu0 %v726_v45  ;;  %v494_v45 = vld [vmem:[%s1154_s6] ss:$0 sm:$0xff] }
  0x7a   :  { %752 = vmatprep.subr.bf16.mxu0 %v958_v0 }
  0x7b   :  { %751 = vmatpush3.bf16.msra.mxu1 %v750_v50 }
  0x7c   :  { %597 = vmatmul.mubr.f32.vlgmr.msra.gmra.mrb[0].mxu0 %v99_v47  ;;  %776 = vmatprep.subr.bf16.mxu1 %v958_v0 }
  0x7d   :  { %666 = vmatprep.mubr.msk.f32.mxu0 %vm959_vm0, %v960_v1  ;;  %754 = vmatpush3.bf16.msra.mxu0 %v753_v54 }
  0x7e   :  { %755 = vmatprep.subr.bf16.mxu0 %v958_v0 }
  0x81   :  { %757 = vmatpush3.bf16.msra.mxu0 %v756_v56 }
  0x82   :  { %758 = vmatprep.subr.bf16.mxu0 %v958_v0 }
  0x85   :  { %760 = vmatpush3.bf16.msra.mxu0 %v759_v59 }
  0x86   :  { %761 = vmatprep.subr.bf16.mxu0 %v958_v0 }
  0x89   :  { %763 = vmatpush3.bf16.msra.mxu0 %v762_v62 }
  0x8a   :  { %764 = vmatprep.subr.bf16.mxu0 %v958_v0 }
  0x8d   :  { %766 = vmatpush3.bf16.msra.mxu0 %v765_v3 }
  0x8e   :  { %767 = vmatprep.subr.bf16.mxu0 %v958_v0 }
  0x91   :  { %769 = vmatpush3.bf16.msra.mxu0 %v768_v6 }
  0x92   :  { %770 = vmatprep.subr.bf16.mxu0 %v958_v0 }
  0x95   :  { %772 = vmatpush3.bf16.msra.mxu0 %v771_v9 }
  0x96   :  { %773 = vmatprep.subr.bf16.mxu0 %v958_v0 }
  0x99   :  { %775 = vmatpush3.bf16.msra.mxu0 %v774_v17 }
 0x14f   :  { %v189_v11 = vpop.f32.mrb[0].mxu0 }
 0x150   :  { %v190_v12 = vadd.f32 %v492_v10, %v189_v11  ;;  %v598_v13 = vpop.f32.mrb[1].mxu0 }
 0x152   :  { %v193_v14 = vmax.f32 %v190_v12, 0.0 }
 0x154   :  { %632 = vmatmul.mubr.f32.vlgmr.msra.gmra.mrb[0].mxu1 %v193_v14 }
 0x155   :  { %701 = vmatprep.mubr.msk.f32.mxu1 %vm959_vm0, %v960_v1  ;;  %778 = vmatpush3.bf16.msra.mxu1 %v777_v21  ;;  %v387_v1 = vld [vmem:[#allocation10 + $0x30] sm:$0xff] }
 0x156   :  { %779 = vmatprep.subr.bf16.mxu1 %v958_v0  ;;  %v786_v28 = vpack.c.bf16 %v388_v27, %v387_v1 }
 0x159   :  { %781 = vmatpush3.bf16.msra.mxu1 %v780_v23 }
 0x15a   :  { %782 = vmatprep.subr.bf16.mxu1 %v958_v0 }
 0x15d   :  { %784 = vmatpush3.bf16.msra.mxu1 %v783_v26 }
 0x15e   :  { %785 = vmatprep.subr.bf16.mxu1 %v958_v0 }
 0x161   :  { %787 = vmatpush3.bf16.msra.mxu1 %v786_v28 }
 0x162   :  { %788 = vmatprep.subr.bf16.mxu1 %v958_v0 }
 0x165   :  { %790 = vmatpush3.bf16.msra.mxu1 %v789_v31 }
 0x166   :  { %791 = vmatprep.subr.bf16.mxu1 %v958_v0 }
 0x169   :  { %793 = vmatpush3.bf16.msra.mxu1 %v792_v34 }
 0x16a   :  { %794 = vmatprep.subr.bf16.mxu1 %v958_v0 }
 0x16d   :  { %796 = vmatpush3.bf16.msra.mxu1 %v795_v37 }
 0x16e   :  { %797 = vmatprep.subr.bf16.mxu1 %v958_v0 }
 0x171   :  { %799 = vmatpush3.bf16.msra.mxu1 %v798_v44 }
 0x227   :  { %v283_v39 = vpop.f32.mrb[0].mxu1 }
 0x228   :  { %v284_v40 = vadd.f32 %v493_v38, %v283_v39  ;;  %v633_v41 = vpop.f32.mrb[1].mxu1 }
 0x22a   :  { %667 = vmatmul.mubr.f32.vlgmr.msra.gmra.mrb[2].mxu0 %v284_v40 }
 0x2fd   :  { %v376_v46 = vpop.f32.mrb[2].mxu0 }
 0x2fe   :  { %v377_v47 = vadd.f32 %v494_v45, %v376_v46  ;;  %v668_v48 = vpop.f32.mrb[3].mxu0 }
 0x300   :  { %v380_v0 = vmax.f32 %v377_v47, 0.0 }
 0x302   :  { %702 = vmatmul.mubr.f32.vlgmr.msra.gmra.mrb[2].mxu1 %v380_v0 }
 0x3d5   :  { %v470_v50 = vpop.f32.mrb[2].mxu1 }
 0x3d6   :  { %v471_v51 = vadd.f32 %v495_v49, %v470_v50  ;;  %v703_v52 = vpop.f32.mrb[3].mxu1 }
 0x3d8   :  { %474 = vst [vmem:[#allocation11] sm:$0xff] %v471_v51 }
 0x3d9   :  { %932 = shalt.err (!%p929_p2)
}
 0x3da   :  { %s933_s10 = scalar_lea.hbm %s1157_s9, 128 }
 0x3db   :  { %p934_p3 = scmp.ne.s32.totalorder %s1157_s9, %s933_s10  ;;  %p937_p4 = scmp.lt.u32.totalorder %s933_s10, %s1157_s9 }
 0x3dd   :  { %p939_p5 = pnand %p937_p4, %p934_p3 }
 0x3df   :  { %942 = shalt.err (!%p939_p5)
}
 0x3e0   :  { %484 = dma.vmem_to_hbm [thread:$0]  %s482_s12, 128, %s1157_s9, [#allocation4]  }
 0x3e1   :  { %949 = dma.done.wait [#allocation4], 128  }
 0x3e2   :  { %950 = vsyncadd [#allocation4], 4294967168 }
 0x3e3   :  { %488 = vsyncpa [#allocation3], 1 }
 0x3e4   :  { %489 = vsyncpa [#allocation6], 1 }
 0x3e5   :  { %490 = vsyncpa [#allocation9], 1 }
 0x3e6   :  { %491 = vsyncpa [#allocation4], 1 }

</bundles_post_ra>
